<compile_context>
chip_gen: v5e
topology: v5e:2x2
jax: 0.10.0
libtpu: 0.0.40
codegen_flags: <defaults>
</compile_context>

<pallas_src>
import functools

import jax
import jax.numpy as jnp
from jax.experimental import pallas as pl
from jax.experimental.pallas import tpu as pltpu


# ---------------------------------------------------------------------------
# Kernel 1: fused scaled-dot-product attention core.
#   q: (1, Sq, d)  k: (1, Sk, d)  v: (1, Sk, dv)  ->  o: (1, Sq, dv)
# ---------------------------------------------------------------------------
def _attn_kernel(q_ref, k_ref, v_ref, o_ref, *, scale):
    q = q_ref[...].astype(jnp.float32)
    k = k_ref[...].astype(jnp.float32)
    v = v_ref[...].astype(jnp.float32)
    s = jnp.einsum("bqd,bkd->bqk", q, k, preferred_element_type=jnp.float32) * scale
    m = jnp.max(s, axis=-1, keepdims=True)
    p = jnp.exp(s - m)
    denom = jnp.sum(p, axis=-1, keepdims=True)
    p = p / denom
    o = jnp.einsum("bqk,bkd->bqd", p, v, preferred_element_type=jnp.float32)
    o_ref[...] = o.astype(o_ref.dtype)


def attention(q, k, v, *, scale):
    """q: (L, Sq, d), k: (L, Sk, d), v: (L, Sk, dv) -> (L, Sq, dv)."""
    L, Sq, d = q.shape
    _, Sk, dv = v.shape
    flops = int(L * (2 * Sq * Sk * d + 2 * Sq * Sk * dv))
    bytes_accessed = int(4 * (q.size + k.size + v.size + L * Sq * dv))
    return pl.pallas_call(
        functools.partial(_attn_kernel, scale=scale),
        out_shape=jax.ShapeDtypeStruct((L, Sq, dv), q.dtype),
        grid_spec=pltpu.PrefetchScalarGridSpec(
            num_scalar_prefetch=0,
            grid=(L,),
            in_specs=[
                pl.BlockSpec((1, Sq, d), lambda l: (l, 0, 0)),
                pl.BlockSpec((1, Sk, d), lambda l: (l, 0, 0)),
                pl.BlockSpec((1, Sk, dv), lambda l: (l, 0, 0)),
            ],
            out_specs=pl.BlockSpec((1, Sq, dv), lambda l: (l, 0, 0)),
        ),
        compiler_params=pltpu.CompilerParams(dimension_semantics=("parallel",)),
        cost_estimate=pl.CostEstimate(
            flops=flops,
            transcendentals=int(L * Sq * Sk),
            bytes_accessed=bytes_accessed,
        ),
    )(q, k, v)


# ---------------------------------------------------------------------------
# Kernel 2: row-tiled linear layer  y = x @ w + b
#   x: (TM, K)  w: (K, Nout)  b: (1, Nout)  ->  y: (TM, Nout)
# ---------------------------------------------------------------------------
def _linear_kernel(x_ref, w_ref, b_ref, o_ref):
    acc = jnp.dot(
        x_ref[...].astype(jnp.float32),
        w_ref[...].astype(jnp.float32),
        preferred_element_type=jnp.float32,
    )
    o_ref[...] = (acc + b_ref[...].astype(jnp.float32)).astype(o_ref.dtype)


def linear(x2d, w, b=None):
    """x2d: (M, K), w: (K, Nout), b: (Nout,) or None -> (M, Nout)."""
    M, K = x2d.shape
    Nout = w.shape[1]
    if b is None:
        b = jnp.zeros((Nout,), dtype=x2d.dtype)
    b2d = b.reshape(1, Nout)

    # Largest row tile that divides M (keeps blocks VMEM-friendly on v7x while
    # amortizing the ~0.35 us per-grid-step overhead); otherwise the full M.
    TM = M
    for cand in (1024, 512, 256, 128):
        if M % cand == 0:
            TM = cand
            break
    grid = (M // TM,)

    flops = int(2 * M * K * Nout)
    bytes_accessed = int(4 * (M * K + K * Nout + Nout + M * Nout))
    return pl.pallas_call(
        _linear_kernel,
        out_shape=jax.ShapeDtypeStruct((M, Nout), x2d.dtype),
        grid_spec=pltpu.PrefetchScalarGridSpec(
            num_scalar_prefetch=0,
            grid=grid,
            in_specs=[
                pl.BlockSpec((TM, K), lambda i: (i, 0)),
                pl.BlockSpec((K, Nout), lambda i: (0, 0)),
                pl.BlockSpec((1, Nout), lambda i: (0, 0)),
            ],
            out_specs=pl.BlockSpec((TM, Nout), lambda i: (i, 0)),
        ),
        compiler_params=pltpu.CompilerParams(dimension_semantics=("parallel",)),
        cost_estimate=pl.CostEstimate(
            flops=flops, transcendentals=0, bytes_accessed=bytes_accessed
        ),
    )(x2d, w, b2d)


# ---------------------------------------------------------------------------
# Full forward (orchestrates the Pallas kernels; reshapes/transposes/concat are
# pure layout plumbing done in JAX).
# ---------------------------------------------------------------------------
def pret_attention_forward(x, tokens, w_qkv, w_proj, b_proj, *, num_heads):
    B, N, C = x.shape
    hd = C // num_heads
    scale = hd ** -0.5
    token_scale = C ** -0.5

    # ---- D&R path: selectors cross-attend over the (detached) patch tokens ----
    task_cls = tokens[:, :, 0:1]      # (T, B, 1, C)
    selectors = tokens[:, :, 1:]      # (T, B, G, C)
    T, _, G, _ = selectors.shape
    q_sel = selectors.reshape(T * B, G, C)
    kv = jnp.broadcast_to(x[None], (T, B, N, C)).reshape(T * B, N, C)
    task_patches = attention(q_sel, kv, kv, scale=token_scale).reshape(T, B, G, C)
    task_x = jnp.concatenate([task_cls, task_patches], axis=2)  # (T, B, H, C)
    H = G + 1

    # ---- task-branch multi-head self attention ----
    qkv_t = linear(task_x.reshape(T * B * H, C), w_qkv)         # (T*B*H, 3C), no bias
    qkv_t = qkv_t.reshape(T, B, H, 3, num_heads, hd)
    qkv_t = jnp.transpose(qkv_t, (3, 0, 1, 4, 2, 5))            # (3, T, B, nh, H, hd)
    Lt = T * B * num_heads
    tq = qkv_t[0].reshape(Lt, H, hd)
    tk = qkv_t[1].reshape(Lt, H, hd)
    tv = qkv_t[2].reshape(Lt, H, hd)
    ot = attention(tq, tk, tv, scale=scale).reshape(T, B, num_heads, H, hd)
    ot = jnp.transpose(ot, (0, 1, 3, 2, 4)).reshape(T * B * H, C)
    task_out = linear(ot, w_proj, b_proj).reshape(T, B, H, C)
    tokens_out = jnp.concatenate([task_out[:, :, 0:1], selectors], axis=2)

    # ---- main branch (the torch.no_grad() block): standard MHA over x ----
    qkv_m = linear(x.reshape(B * N, C), w_qkv).reshape(B, N, 3, num_heads, hd)
    qkv_m = jnp.transpose(qkv_m, (2, 0, 3, 1, 4))               # (3, B, nh, N, hd)
    Lm = B * num_heads
    q = qkv_m[0].reshape(Lm, N, hd)
    k = qkv_m[1].reshape(Lm, N, hd)
    v = qkv_m[2].reshape(Lm, N, hd)
    om = attention(q, k, v, scale=scale).reshape(B, num_heads, N, hd)
    om = jnp.transpose(om, (0, 2, 1, 3)).reshape(B * N, C)
    x_out = linear(om, w_proj, b_proj).reshape(B, N, C)

    return x_out, tokens_out


# ---------------------------------------------------------------------------
# Plain-JAX reference (mirrors the PyTorch forward) for the correctness check.
# ---------------------------------------------------------------------------
def reference_forward(x, tokens, w_qkv, w_proj, b_proj, *, num_heads):
    B, N, C = x.shape
    hd = C // num_heads
    scale = hd ** -0.5
    token_scale = C ** -0.5

    task_cls = tokens[:, :, 0:1]
    selectors = tokens[:, :, 1:]
    g_patch_attn = jnp.einsum("tbsc,bnc->tbsn", selectors, x) * token_scale
    g_soft = jax.nn.softmax(g_patch_attn, axis=-1)
    task_patches = jnp.einsum("bnc,tbsn->tbsc", x, g_soft)
    task_x = jnp.concatenate([task_cls, task_patches], axis=2)
    T, _, H, _ = task_x.shape

    qkv_t = (task_x @ w_qkv).reshape(T, B, H, 3, num_heads, hd)
    qkv_t = jnp.transpose(qkv_t, (3, 0, 1, 4, 2, 5))
    tq, tk, tv = qkv_t[0], qkv_t[1], qkv_t[2]
    a = jax.nn.softmax(jnp.einsum("tbhqd,tbhkd->tbhqk", tq, tk) * scale, axis=-1)
    ot = jnp.einsum("tbhqk,tbhkd->tbhqd", a, tv)
    ot = jnp.transpose(ot, (0, 1, 3, 2, 4)).reshape(T, B, H, C)
    task_out = ot @ w_proj + b_proj
    tokens_out = jnp.concatenate([task_out[:, :, 0:1], selectors], axis=2)

    qkv_m = (x @ w_qkv).reshape(B, N, 3, num_heads, hd)
    qkv_m = jnp.transpose(qkv_m, (2, 0, 3, 1, 4))
    q, k, v = qkv_m[0], qkv_m[1], qkv_m[2]
    am = jax.nn.softmax(jnp.einsum("bhqd,bhkd->bhqk", q, k) * scale, axis=-1)
    om = jnp.einsum("bhqk,bhkd->bhqd", am, v)
    om = jnp.transpose(om, (0, 2, 1, 3)).reshape(B, N, C)
    x_out = om @ w_proj + b_proj
    return x_out, tokens_out


if __name__ == "__main__":
    key = jax.random.PRNGKey(0)
    B, N, C = 2, 16, 32          # batch, sequence, hidden
    num_heads = 8                # head_dim = 4
    T, G = 1, 4                  # one task, 4 selectors -> tokens (T, B, G+1, C)

    kx, kt, kw1, kw2, kb = jax.random.split(key, 5)
    x = jax.random.normal(kx, (B, N, C), dtype=jnp.float32)
    tokens = jax.random.normal(kt, (T, B, G + 1, C), dtype=jnp.float32)
    # qkv: nn.Linear(C, 3C, bias=False)  (stored pre-transposed as (C, 3C))
    w_qkv = 0.1 * jax.random.normal(kw1, (C, 3 * C), dtype=jnp.float32)
    # proj: nn.Linear(C, C)              (stored pre-transposed as (C, C))
    w_proj = 0.1 * jax.random.normal(kw2, (C, C), dtype=jnp.float32)
    b_proj = 0.05 * jax.random.normal(kb, (C,), dtype=jnp.float32)

    fwd = jax.jit(functools.partial(pret_attention_forward, num_heads=num_heads))
    x_out, tokens_out = fwd(x, tokens, w_qkv, w_proj, b_proj)
    x_out = jax.block_until_ready(x_out)
    tokens_out = jax.block_until_ready(tokens_out)

    x_ref, tokens_ref = reference_forward(
        x, tokens, w_qkv, w_proj, b_proj, num_heads=num_heads
    )
    assert x_out.shape == (B, N, C)
    assert tokens_out.shape == (T, B, G + 1, C)
    assert jnp.allclose(x_out, x_ref, atol=1e-4, rtol=1e-4), "x mismatch vs reference"
    assert jnp.allclose(tokens_out, tokens_ref, atol=1e-4, rtol=1e-4), (
        "tokens mismatch vs reference"
    )

    print("KERNEL_OK")
</pallas_src>

<mosaic_0001>
module attributes {stable_mosaic.version = 11 : i64} {
  func.func @_linear_kernel(%arg0: i32, %arg1: memref<32x32xf32, #tpu.memory_space<vmem>>, %arg2: memref<32x96xf32, #tpu.memory_space<vmem>>, %arg3: memref<1x96xf32, #tpu.memory_space<vmem>>, %arg4: memref<32x96xf32, #tpu.memory_space<vmem>>) attributes {dimension_semantics = [#tpu.dimension_semantics<parallel>], iteration_bounds = array<i64: 1>, scalar_prefetch = 0 : i64, scratch_operands = 0 : i64, tpu.core_type = #tpu.core_type<tc>, window_params = [{transform_indices = @transform_0, window_bounds = array<i64: 32, 32>}, {pipeline_mode = #tpu.pipeline_mode<synchronous>, transform_indices = @transform_1, window_bounds = array<i64: 32, 96>}, {pipeline_mode = #tpu.pipeline_mode<synchronous>, transform_indices = @transform_2, window_bounds = array<i64: 1, 96>}, {transform_indices = @transform_3, window_bounds = array<i64: 32, 96>}]} {
    %c0 = arith.constant 0 : index
    %c0_0 = arith.constant 0 : index
    %0 = vector.load %arg1[%c0, %c0_0] : memref<32x32xf32, #tpu.memory_space<vmem>>, vector<32x32xf32>
    %c0_1 = arith.constant 0 : index
    %c0_2 = arith.constant 0 : index
    %1 = vector.load %arg2[%c0_1, %c0_2] : memref<32x96xf32, #tpu.memory_space<vmem>>, vector<32x96xf32>
    %cst = arith.constant dense<0.000000e+00> : vector<32x96xf32>
    %2 = tpu.matmul %0, %1, %cst {dimension_numbers = #tpu.dot_dimension_numbers<[1], [0], [0], [1], [0, 0, 1, 1], [], []>} : vector<32x32xf32>, vector<32x96xf32>, vector<32x96xf32> -> vector<32x96xf32>
    %c0_3 = arith.constant 0 : index
    %c0_4 = arith.constant 0 : index
    %3 = vector.load %arg3[%c0_3, %c0_4] : memref<1x96xf32, #tpu.memory_space<vmem>>, vector<1x96xf32>
    %4 = vector.broadcast %3 : vector<1x96xf32> to vector<32x96xf32>
    %5 = arith.addf %2, %4 : vector<32x96xf32>
    %c0_5 = arith.constant 0 : index
    %c0_6 = arith.constant 0 : index
    %6 = vector.load %arg4[%c0_5, %c0_6] : memref<32x96xf32, #tpu.memory_space<vmem>>, vector<32x96xf32>
    tpu.vector_store %arg4[%c0_5, %c0_6], %5 {strides = array<i32>} : memref<32x96xf32, #tpu.memory_space<vmem>>, vector<32x96xf32>,
    return
  }
  func.func @transform_0(%arg0: i32) -> (i32, i32) {
    %c0_i32 = arith.constant 0 : i32
    %c0_i32_0 = arith.constant 0 : i32
    return %arg0, %c0_i32 : i32, i32
  }
  func.func @transform_1(%arg0: i32) -> (i32, i32) {
    %c0_i32 = arith.constant 0 : i32
    %c0_i32_0 = arith.constant 0 : i32
    %c0_i32_1 = arith.constant 0 : i32
    return %c0_i32, %c0_i32_0 : i32, i32
  }
  func.func @transform_2(%arg0: i32) -> (i32, i32) {
    %c0_i32 = arith.constant 0 : i32
    %c0_i32_0 = arith.constant 0 : i32
    %c0_i32_1 = arith.constant 0 : i32
    return %c0_i32, %c0_i32_0 : i32, i32
  }
  func.func @transform_3(%arg0: i32) -> (i32, i32) {
    %c0_i32 = arith.constant 0 : i32
    %c0_i32_0 = arith.constant 0 : i32
    return %arg0, %c0_i32 : i32, i32
  }
}

module attributes {stable_mosaic.version = 11 : i64} {
  func.func @_attn_kernel(%arg0: i32, %arg1: memref<1x16x4xf32, #tpu.memory_space<vmem>>, %arg2: memref<1x16x4xf32, #tpu.memory_space<vmem>>, %arg3: memref<1x16x4xf32, #tpu.memory_space<vmem>>, %arg4: memref<1x16x4xf32, #tpu.memory_space<vmem>>) attributes {dimension_semantics = [#tpu.dimension_semantics<parallel>], iteration_bounds = array<i64: 16>, scalar_prefetch = 0 : i64, scratch_operands = 0 : i64, tpu.core_type = #tpu.core_type<tc>, window_params = [{transform_indices = @transform_0, window_bounds = array<i64: 1, 16, 4>}, {transform_indices = @transform_1, window_bounds = array<i64: 1, 16, 4>}, {transform_indices = @transform_2, window_bounds = array<i64: 1, 16, 4>}, {transform_indices = @transform_3, window_bounds = array<i64: 1, 16, 4>}]} {
    %c0 = arith.constant 0 : index
    %c0_0 = arith.constant 0 : index
    %c0_1 = arith.constant 0 : index
    %0 = vector.load %arg1[%c0, %c0_0, %c0_1] : memref<1x16x4xf32, #tpu.memory_space<vmem>>, vector<1x16x4xf32>
    %c0_2 = arith.constant 0 : index
    %c0_3 = arith.constant 0 : index
    %c0_4 = arith.constant 0 : index
    %1 = vector.load %arg2[%c0_2, %c0_3, %c0_4] : memref<1x16x4xf32, #tpu.memory_space<vmem>>, vector<1x16x4xf32>
    %c0_5 = arith.constant 0 : index
    %c0_6 = arith.constant 0 : index
    %c0_7 = arith.constant 0 : index
    %2 = vector.load %arg3[%c0_5, %c0_6, %c0_7] : memref<1x16x4xf32, #tpu.memory_space<vmem>>, vector<1x16x4xf32>
    "tpu.trace_start"() <{level = 10 : i32, message = "bqd,bkd->bqk"}> : () -> ()
    %cst = arith.constant dense<0.000000e+00> : vector<1x16x16xf32>
    %3 = tpu.matmul %0, %1, %cst {dimension_numbers = #tpu.dot_dimension_numbers<[2], [2], [1], [1], [0, 0, 0, 1, 1, 1], [0], [0]>} : vector<1x16x4xf32>, vector<1x16x4xf32>, vector<1x16x16xf32> -> vector<1x16x16xf32>
    "tpu.trace_stop"() : () -> ()
    %cst_8 = arith.constant 5.000000e-01 : f32
    %4 = vector.broadcast %cst_8 : f32 to vector<1x16x16xf32>
    %5 = arith.mulf %3, %4 : vector<1x16x16xf32>
    %cst_9 = arith.constant dense<0xFF800000> : vector<1x16xf32>
    %6 = vector.multi_reduction <maximumf>, %5, %cst_9 [2] : vector<1x16x16xf32> to vector<1x16xf32>
    %7 = vector.shape_cast %6 : vector<1x16xf32> to vector<1x16x1xf32>
    %8 = vector.broadcast %7 : vector<1x16x1xf32> to vector<1x16x16xf32>
    %9 = arith.subf %5, %8 : vector<1x16x16xf32>
    %10 = math.exp %9 : vector<1x16x16xf32>
    %cst_10 = arith.constant dense<0.000000e+00> : vector<1x16xf32>
    %11 = vector.multi_reduction <add>, %10, %cst_10 [2] : vector<1x16x16xf32> to vector<1x16xf32>
    %12 = vector.shape_cast %11 : vector<1x16xf32> to vector<1x16x1xf32>
    %13 = vector.broadcast %12 : vector<1x16x1xf32> to vector<1x16x16xf32>
    %14 = arith.divf %10, %13 : vector<1x16x16xf32>
    "tpu.trace_start"() <{level = 10 : i32, message = "bqk,bkd->bqd"}> : () -> ()
    %cst_11 = arith.constant dense<0.000000e+00> : vector<1x16x4xf32>
    %15 = tpu.matmul %14, %2, %cst_11 {dimension_numbers = #tpu.dot_dimension_numbers<[2], [1], [1], [2], [0, 0, 0, 1, 1, 2], [0], [0]>} : vector<1x16x16xf32>, vector<1x16x4xf32>, vector<1x16x4xf32> -> vector<1x16x4xf32>
    "tpu.trace_stop"() : () -> ()
    %c0_12 = arith.constant 0 : index
    %c0_13 = arith.constant 0 : index
    %c0_14 = arith.constant 0 : index
    %16 = vector.load %arg4[%c0_12, %c0_13, %c0_14] : memref<1x16x4xf32, #tpu.memory_space<vmem>>, vector<1x16x4xf32>
    tpu.vector_store %arg4[%c0_12, %c0_13, %c0_14], %15 {strides = array<i32>} : memref<1x16x4xf32, #tpu.memory_space<vmem>>, vector<1x16x4xf32>,
    return
  }
  func.func @transform_0(%arg0: i32) -> (i32, i32, i32) {
    %c0_i32 = arith.constant 0 : i32
    %c0_i32_0 = arith.constant 0 : i32
    %c0_i32_1 = arith.constant 0 : i32
    return %arg0, %c0_i32, %c0_i32_0 : i32, i32, i32
  }
  func.func @transform_1(%arg0: i32) -> (i32, i32, i32) {
    %c0_i32 = arith.constant 0 : i32
    %c0_i32_0 = arith.constant 0 : i32
    %c0_i32_1 = arith.constant 0 : i32
    return %arg0, %c0_i32, %c0_i32_0 : i32, i32, i32
  }
  func.func @transform_2(%arg0: i32) -> (i32, i32, i32) {
    %c0_i32 = arith.constant 0 : i32
    %c0_i32_0 = arith.constant 0 : i32
    %c0_i32_1 = arith.constant 0 : i32
    return %arg0, %c0_i32, %c0_i32_0 : i32, i32, i32
  }
  func.func @transform_3(%arg0: i32) -> (i32, i32, i32) {
    %c0_i32 = arith.constant 0 : i32
    %c0_i32_0 = arith.constant 0 : i32
    %c0_i32_1 = arith.constant 0 : i32
    return %arg0, %c0_i32, %c0_i32_0 : i32, i32, i32
  }
}

module attributes {stable_mosaic.version = 11 : i64} {
  func.func @_linear_kernel(%arg0: i32, %arg1: memref<32x32xf32, #tpu.memory_space<vmem>>, %arg2: memref<32x32xf32, #tpu.memory_space<vmem>>, %arg3: memref<1x32xf32, #tpu.memory_space<vmem>>, %arg4: memref<32x32xf32, #tpu.memory_space<vmem>>) attributes {dimension_semantics = [#tpu.dimension_semantics<parallel>], iteration_bounds = array<i64: 1>, scalar_prefetch = 0 : i64, scratch_operands = 0 : i64, tpu.core_type = #tpu.core_type<tc>, window_params = [{transform_indices = @transform_0, window_bounds = array<i64: 32, 32>}, {pipeline_mode = #tpu.pipeline_mode<synchronous>, transform_indices = @transform_1, window_bounds = array<i64: 32, 32>}, {pipeline_mode = #tpu.pipeline_mode<synchronous>, transform_indices = @transform_2, window_bounds = array<i64: 1, 32>}, {transform_indices = @transform_3, window_bounds = array<i64: 32, 32>}]} {
    %c0 = arith.constant 0 : index
    %c0_0 = arith.constant 0 : index
    %0 = vector.load %arg1[%c0, %c0_0] : memref<32x32xf32, #tpu.memory_space<vmem>>, vector<32x32xf32>
    %c0_1 = arith.constant 0 : index
    %c0_2 = arith.constant 0 : index
    %1 = vector.load %arg2[%c0_1, %c0_2] : memref<32x32xf32, #tpu.memory_space<vmem>>, vector<32x32xf32>
    %cst = arith.constant dense<0.000000e+00> : vector<32x32xf32>
    %2 = tpu.matmul %0, %1, %cst {dimension_numbers = #tpu.dot_dimension_numbers<[1], [0], [0], [1], [0, 0, 1, 1], [], []>} : vector<32x32xf32>, vector<32x32xf32>, vector<32x32xf32> -> vector<32x32xf32>
    %c0_3 = arith.constant 0 : index
    %c0_4 = arith.constant 0 : index
    %3 = vector.load %arg3[%c0_3, %c0_4] : memref<1x32xf32, #tpu.memory_space<vmem>>, vector<1x32xf32>
    %4 = vector.broadcast %3 : vector<1x32xf32> to vector<32x32xf32>
    %5 = arith.addf %2, %4 : vector<32x32xf32>
    %c0_5 = arith.constant 0 : index
    %c0_6 = arith.constant 0 : index
    %6 = vector.load %arg4[%c0_5, %c0_6] : memref<32x32xf32, #tpu.memory_space<vmem>>, vector<32x32xf32>
    tpu.vector_store %arg4[%c0_5, %c0_6], %5 {strides = array<i32>} : memref<32x32xf32, #tpu.memory_space<vmem>>, vector<32x32xf32>,
    return
  }
  func.func @transform_0(%arg0: i32) -> (i32, i32) {
    %c0_i32 = arith.constant 0 : i32
    %c0_i32_0 = arith.constant 0 : i32
    return %arg0, %c0_i32 : i32, i32
  }
  func.func @transform_1(%arg0: i32) -> (i32, i32) {
    %c0_i32 = arith.constant 0 : i32
    %c0_i32_0 = arith.constant 0 : i32
    %c0_i32_1 = arith.constant 0 : i32
    return %c0_i32, %c0_i32_0 : i32, i32
  }
  func.func @transform_2(%arg0: i32) -> (i32, i32) {
    %c0_i32 = arith.constant 0 : i32
    %c0_i32_0 = arith.constant 0 : i32
    %c0_i32_1 = arith.constant 0 : i32
    return %c0_i32, %c0_i32_0 : i32, i32
  }
  func.func @transform_3(%arg0: i32) -> (i32, i32) {
    %c0_i32 = arith.constant 0 : i32
    %c0_i32_0 = arith.constant 0 : i32
    return %arg0, %c0_i32 : i32, i32
  }
}

module attributes {stable_mosaic.version = 11 : i64} {
  func.func @_attn_kernel(%arg0: i32, %arg1: memref<1x4x32xf32, #tpu.memory_space<vmem>>, %arg2: memref<1x16x32xf32, #tpu.memory_space<vmem>>, %arg3: memref<1x16x32xf32, #tpu.memory_space<vmem>>, %arg4: memref<1x4x32xf32, #tpu.memory_space<vmem>>) attributes {dimension_semantics = [#tpu.dimension_semantics<parallel>], iteration_bounds = array<i64: 2>, scalar_prefetch = 0 : i64, scratch_operands = 0 : i64, tpu.core_type = #tpu.core_type<tc>, window_params = [{transform_indices = @transform_0, window_bounds = array<i64: 1, 4, 32>}, {transform_indices = @transform_1, window_bounds = array<i64: 1, 16, 32>}, {transform_indices = @transform_2, window_bounds = array<i64: 1, 16, 32>}, {transform_indices = @transform_3, window_bounds = array<i64: 1, 4, 32>}]} {
    %c0 = arith.constant 0 : index
    %c0_0 = arith.constant 0 : index
    %c0_1 = arith.constant 0 : index
    %0 = vector.load %arg1[%c0, %c0_0, %c0_1] : memref<1x4x32xf32, #tpu.memory_space<vmem>>, vector<1x4x32xf32>
    %c0_2 = arith.constant 0 : index
    %c0_3 = arith.constant 0 : index
    %c0_4 = arith.constant 0 : index
    %1 = vector.load %arg2[%c0_2, %c0_3, %c0_4] : memref<1x16x32xf32, #tpu.memory_space<vmem>>, vector<1x16x32xf32>
    %c0_5 = arith.constant 0 : index
    %c0_6 = arith.constant 0 : index
    %c0_7 = arith.constant 0 : index
    %2 = vector.load %arg3[%c0_5, %c0_6, %c0_7] : memref<1x16x32xf32, #tpu.memory_space<vmem>>, vector<1x16x32xf32>
    "tpu.trace_start"() <{level = 10 : i32, message = "bqd,bkd->bqk"}> : () -> ()
    %cst = arith.constant dense<0.000000e+00> : vector<1x4x16xf32>
    %3 = tpu.matmul %0, %1, %cst {dimension_numbers = #tpu.dot_dimension_numbers<[2], [2], [1], [1], [0, 0, 0, 1, 1, 1], [0], [0]>} : vector<1x4x32xf32>, vector<1x16x32xf32>, vector<1x4x16xf32> -> vector<1x4x16xf32>
    "tpu.trace_stop"() : () -> ()
    %cst_8 = arith.constant 0.176776692 : f32
    %4 = vector.broadcast %cst_8 : f32 to vector<1x4x16xf32>
    %5 = arith.mulf %3, %4 : vector<1x4x16xf32>
    %cst_9 = arith.constant dense<0xFF800000> : vector<1x4xf32>
    %6 = vector.multi_reduction <maximumf>, %5, %cst_9 [2] : vector<1x4x16xf32> to vector<1x4xf32>
    %7 = vector.shape_cast %6 : vector<1x4xf32> to vector<1x4x1xf32>
    %8 = vector.broadcast %7 : vector<1x4x1xf32> to vector<1x4x16xf32>
    %9 = arith.subf %5, %8 : vector<1x4x16xf32>
    %10 = math.exp %9 : vector<1x4x16xf32>
    %cst_10 = arith.constant dense<0.000000e+00> : vector<1x4xf32>
    %11 = vector.multi_reduction <add>, %10, %cst_10 [2] : vector<1x4x16xf32> to vector<1x4xf32>
    %12 = vector.shape_cast %11 : vector<1x4xf32> to vector<1x4x1xf32>
    %13 = vector.broadcast %12 : vector<1x4x1xf32> to vector<1x4x16xf32>
    %14 = arith.divf %10, %13 : vector<1x4x16xf32>
    "tpu.trace_start"() <{level = 10 : i32, message = "bqk,bkd->bqd"}> : () -> ()
    %cst_11 = arith.constant dense<0.000000e+00> : vector<1x4x32xf32>
    %15 = tpu.matmul %14, %2, %cst_11 {dimension_numbers = #tpu.dot_dimension_numbers<[2], [1], [1], [2], [0, 0, 0, 1, 1, 2], [0], [0]>} : vector<1x4x16xf32>, vector<1x16x32xf32>, vector<1x4x32xf32> -> vector<1x4x32xf32>
    "tpu.trace_stop"() : () -> ()
    %c0_12 = arith.constant 0 : index
    %c0_13 = arith.constant 0 : index
    %c0_14 = arith.constant 0 : index
    %16 = vector.load %arg4[%c0_12, %c0_13, %c0_14] : memref<1x4x32xf32, #tpu.memory_space<vmem>>, vector<1x4x32xf32>
    tpu.vector_store %arg4[%c0_12, %c0_13, %c0_14], %15 {strides = array<i32>} : memref<1x4x32xf32, #tpu.memory_space<vmem>>, vector<1x4x32xf32>,
    return
  }
  func.func @transform_0(%arg0: i32) -> (i32, i32, i32) {
    %c0_i32 = arith.constant 0 : i32
    %c0_i32_0 = arith.constant 0 : i32
    %c0_i32_1 = arith.constant 0 : i32
    return %arg0, %c0_i32, %c0_i32_0 : i32, i32, i32
  }
  func.func @transform_1(%arg0: i32) -> (i32, i32, i32) {
    %c0_i32 = arith.constant 0 : i32
    %c0_i32_0 = arith.constant 0 : i32
    %c0_i32_1 = arith.constant 0 : i32
    return %arg0, %c0_i32, %c0_i32_0 : i32, i32, i32
  }
  func.func @transform_2(%arg0: i32) -> (i32, i32, i32) {
    %c0_i32 = arith.constant 0 : i32
    %c0_i32_0 = arith.constant 0 : i32
    %c0_i32_1 = arith.constant 0 : i32
    return %arg0, %c0_i32, %c0_i32_0 : i32, i32, i32
  }
  func.func @transform_3(%arg0: i32) -> (i32, i32, i32) {
    %c0_i32 = arith.constant 0 : i32
    %c0_i32_0 = arith.constant 0 : i32
    %c0_i32_1 = arith.constant 0 : i32
    return %arg0, %c0_i32, %c0_i32_0 : i32, i32, i32
  }
}

module attributes {stable_mosaic.version = 11 : i64} {
  func.func @_attn_kernel(%arg0: i32, %arg1: memref<1x5x4xf32, #tpu.memory_space<vmem>>, %arg2: memref<1x5x4xf32, #tpu.memory_space<vmem>>, %arg3: memref<1x5x4xf32, #tpu.memory_space<vmem>>, %arg4: memref<1x5x4xf32, #tpu.memory_space<vmem>>) attributes {dimension_semantics = [#tpu.dimension_semantics<parallel>], iteration_bounds = array<i64: 16>, scalar_prefetch = 0 : i64, scratch_operands = 0 : i64, tpu.core_type = #tpu.core_type<tc>, window_params = [{transform_indices = @transform_0, window_bounds = array<i64: 1, 5, 4>}, {transform_indices = @transform_1, window_bounds = array<i64: 1, 5, 4>}, {transform_indices = @transform_2, window_bounds = array<i64: 1, 5, 4>}, {transform_indices = @transform_3, window_bounds = array<i64: 1, 5, 4>}]} {
    %c0 = arith.constant 0 : index
    %c0_0 = arith.constant 0 : index
    %c0_1 = arith.constant 0 : index
    %0 = vector.load %arg1[%c0, %c0_0, %c0_1] : memref<1x5x4xf32, #tpu.memory_space<vmem>>, vector<1x5x4xf32>
    %c0_2 = arith.constant 0 : index
    %c0_3 = arith.constant 0 : index
    %c0_4 = arith.constant 0 : index
    %1 = vector.load %arg2[%c0_2, %c0_3, %c0_4] : memref<1x5x4xf32, #tpu.memory_space<vmem>>, vector<1x5x4xf32>
    %c0_5 = arith.constant 0 : index
    %c0_6 = arith.constant 0 : index
    %c0_7 = arith.constant 0 : index
    %2 = vector.load %arg3[%c0_5, %c0_6, %c0_7] : memref<1x5x4xf32, #tpu.memory_space<vmem>>, vector<1x5x4xf32>
    "tpu.trace_start"() <{level = 10 : i32, message = "bqd,bkd->bqk"}> : () -> ()
    %cst = arith.constant dense<0.000000e+00> : vector<1x5x5xf32>
    %3 = tpu.matmul %0, %1, %cst {dimension_numbers = #tpu.dot_dimension_numbers<[2], [2], [1], [1], [0, 0, 0, 1, 1, 1], [0], [0]>} : vector<1x5x4xf32>, vector<1x5x4xf32>, vector<1x5x5xf32> -> vector<1x5x5xf32>
    "tpu.trace_stop"() : () -> ()
    %cst_8 = arith.constant 5.000000e-01 : f32
    %4 = vector.broadcast %cst_8 : f32 to vector<1x5x5xf32>
    %5 = arith.mulf %3, %4 : vector<1x5x5xf32>
    %cst_9 = arith.constant dense<0xFF800000> : vector<1x5xf32>
    %6 = vector.multi_reduction <maximumf>, %5, %cst_9 [2] : vector<1x5x5xf32> to vector<1x5xf32>
    %7 = vector.shape_cast %6 : vector<1x5xf32> to vector<1x5x1xf32>
    %8 = vector.broadcast %7 : vector<1x5x1xf32> to vector<1x5x5xf32>
    %9 = arith.subf %5, %8 : vector<1x5x5xf32>
    %10 = math.exp %9 : vector<1x5x5xf32>
    %cst_10 = arith.constant dense<0.000000e+00> : vector<1x5xf32>
    %11 = vector.multi_reduction <add>, %10, %cst_10 [2] : vector<1x5x5xf32> to vector<1x5xf32>
    %12 = vector.shape_cast %11 : vector<1x5xf32> to vector<1x5x1xf32>
    %13 = vector.broadcast %12 : vector<1x5x1xf32> to vector<1x5x5xf32>
    %14 = arith.divf %10, %13 : vector<1x5x5xf32>
    "tpu.trace_start"() <{level = 10 : i32, message = "bqk,bkd->bqd"}> : () -> ()
    %cst_11 = arith.constant dense<0.000000e+00> : vector<1x5x4xf32>
    %15 = tpu.matmul %14, %2, %cst_11 {dimension_numbers = #tpu.dot_dimension_numbers<[2], [1], [1], [2], [0, 0, 0, 1, 1, 2], [0], [0]>} : vector<1x5x5xf32>, vector<1x5x4xf32>, vector<1x5x4xf32> -> vector<1x5x4xf32>
    "tpu.trace_stop"() : () -> ()
    %c0_12 = arith.constant 0 : index
    %c0_13 = arith.constant 0 : index
    %c0_14 = arith.constant 0 : index
    %16 = vector.load %arg4[%c0_12, %c0_13, %c0_14] : memref<1x5x4xf32, #tpu.memory_space<vmem>>, vector<1x5x4xf32>
    tpu.vector_store %arg4[%c0_12, %c0_13, %c0_14], %15 {strides = array<i32>} : memref<1x5x4xf32, #tpu.memory_space<vmem>>, vector<1x5x4xf32>,
    return
  }
  func.func @transform_0(%arg0: i32) -> (i32, i32, i32) {
    %c0_i32 = arith.constant 0 : i32
    %c0_i32_0 = arith.constant 0 : i32
    %c0_i32_1 = arith.constant 0 : i32
    return %arg0, %c0_i32, %c0_i32_0 : i32, i32, i32
  }
  func.func @transform_1(%arg0: i32) -> (i32, i32, i32) {
    %c0_i32 = arith.constant 0 : i32
    %c0_i32_0 = arith.constant 0 : i32
    %c0_i32_1 = arith.constant 0 : i32
    return %arg0, %c0_i32, %c0_i32_0 : i32, i32, i32
  }
  func.func @transform_2(%arg0: i32) -> (i32, i32, i32) {
    %c0_i32 = arith.constant 0 : i32
    %c0_i32_0 = arith.constant 0 : i32
    %c0_i32_1 = arith.constant 0 : i32
    return %arg0, %c0_i32, %c0_i32_0 : i32, i32, i32
  }
  func.func @transform_3(%arg0: i32) -> (i32, i32, i32) {
    %c0_i32 = arith.constant 0 : i32
    %c0_i32_0 = arith.constant 0 : i32
    %c0_i32_1 = arith.constant 0 : i32
    return %arg0, %c0_i32, %c0_i32_0 : i32, i32, i32
  }
}

module attributes {stable_mosaic.version = 11 : i64} {
  func.func @_linear_kernel(%arg0: i32, %arg1: memref<10x32xf32, #tpu.memory_space<vmem>>, %arg2: memref<32x96xf32, #tpu.memory_space<vmem>>, %arg3: memref<1x96xf32, #tpu.memory_space<vmem>>, %arg4: memref<10x96xf32, #tpu.memory_space<vmem>>) attributes {dimension_semantics = [#tpu.dimension_semantics<parallel>], iteration_bounds = array<i64: 1>, scalar_prefetch = 0 : i64, scratch_operands = 0 : i64, tpu.core_type = #tpu.core_type<tc>, window_params = [{transform_indices = @transform_0, window_bounds = array<i64: 10, 32>}, {pipeline_mode = #tpu.pipeline_mode<synchronous>, transform_indices = @transform_1, window_bounds = array<i64: 32, 96>}, {pipeline_mode = #tpu.pipeline_mode<synchronous>, transform_indices = @transform_2, window_bounds = array<i64: 1, 96>}, {transform_indices = @transform_3, window_bounds = array<i64: 10, 96>}]} {
    %c0 = arith.constant 0 : index
    %c0_0 = arith.constant 0 : index
    %0 = vector.load %arg1[%c0, %c0_0] : memref<10x32xf32, #tpu.memory_space<vmem>>, vector<10x32xf32>
    %c0_1 = arith.constant 0 : index
    %c0_2 = arith.constant 0 : index
    %1 = vector.load %arg2[%c0_1, %c0_2] : memref<32x96xf32, #tpu.memory_space<vmem>>, vector<32x96xf32>
    %cst = arith.constant dense<0.000000e+00> : vector<10x96xf32>
    %2 = tpu.matmul %0, %1, %cst {dimension_numbers = #tpu.dot_dimension_numbers<[1], [0], [0], [1], [0, 0, 1, 1], [], []>} : vector<10x32xf32>, vector<32x96xf32>, vector<10x96xf32> -> vector<10x96xf32>
    %c0_3 = arith.constant 0 : index
    %c0_4 = arith.constant 0 : index
    %3 = vector.load %arg3[%c0_3, %c0_4] : memref<1x96xf32, #tpu.memory_space<vmem>>, vector<1x96xf32>
    %4 = vector.broadcast %3 : vector<1x96xf32> to vector<10x96xf32>
    %5 = arith.addf %2, %4 : vector<10x96xf32>
    %c0_5 = arith.constant 0 : index
    %c0_6 = arith.constant 0 : index
    %6 = vector.load %arg4[%c0_5, %c0_6] : memref<10x96xf32, #tpu.memory_space<vmem>>, vector<10x96xf32>
    tpu.vector_store %arg4[%c0_5, %c0_6], %5 {strides = array<i32>} : memref<10x96xf32, #tpu.memory_space<vmem>>, vector<10x96xf32>,
    return
  }
  func.func @transform_0(%arg0: i32) -> (i32, i32) {
    %c0_i32 = arith.constant 0 : i32
    %c0_i32_0 = arith.constant 0 : i32
    return %arg0, %c0_i32 : i32, i32
  }
  func.func @transform_1(%arg0: i32) -> (i32, i32) {
    %c0_i32 = arith.constant 0 : i32
    %c0_i32_0 = arith.constant 0 : i32
    %c0_i32_1 = arith.constant 0 : i32
    return %c0_i32, %c0_i32_0 : i32, i32
  }
  func.func @transform_2(%arg0: i32) -> (i32, i32) {
    %c0_i32 = arith.constant 0 : i32
    %c0_i32_0 = arith.constant 0 : i32
    %c0_i32_1 = arith.constant 0 : i32
    return %c0_i32, %c0_i32_0 : i32, i32
  }
  func.func @transform_3(%arg0: i32) -> (i32, i32) {
    %c0_i32 = arith.constant 0 : i32
    %c0_i32_0 = arith.constant 0 : i32
    return %arg0, %c0_i32 : i32, i32
  }
}

module attributes {stable_mosaic.version = 11 : i64} {
  func.func @_linear_kernel(%arg0: i32, %arg1: memref<10x32xf32, #tpu.memory_space<vmem>>, %arg2: memref<32x32xf32, #tpu.memory_space<vmem>>, %arg3: memref<1x32xf32, #tpu.memory_space<vmem>>, %arg4: memref<10x32xf32, #tpu.memory_space<vmem>>) attributes {dimension_semantics = [#tpu.dimension_semantics<parallel>], iteration_bounds = array<i64: 1>, scalar_prefetch = 0 : i64, scratch_operands = 0 : i64, tpu.core_type = #tpu.core_type<tc>, window_params = [{transform_indices = @transform_0, window_bounds = array<i64: 10, 32>}, {pipeline_mode = #tpu.pipeline_mode<synchronous>, transform_indices = @transform_1, window_bounds = array<i64: 32, 32>}, {pipeline_mode = #tpu.pipeline_mode<synchronous>, transform_indices = @transform_2, window_bounds = array<i64: 1, 32>}, {transform_indices = @transform_3, window_bounds = array<i64: 10, 32>}]} {
    %c0 = arith.constant 0 : index
    %c0_0 = arith.constant 0 : index
    %0 = vector.load %arg1[%c0, %c0_0] : memref<10x32xf32, #tpu.memory_space<vmem>>, vector<10x32xf32>
    %c0_1 = arith.constant 0 : index
    %c0_2 = arith.constant 0 : index
    %1 = vector.load %arg2[%c0_1, %c0_2] : memref<32x32xf32, #tpu.memory_space<vmem>>, vector<32x32xf32>
    %cst = arith.constant dense<0.000000e+00> : vector<10x32xf32>
    %2 = tpu.matmul %0, %1, %cst {dimension_numbers = #tpu.dot_dimension_numbers<[1], [0], [0], [1], [0, 0, 1, 1], [], []>} : vector<10x32xf32>, vector<32x32xf32>, vector<10x32xf32> -> vector<10x32xf32>
    %c0_3 = arith.constant 0 : index
    %c0_4 = arith.constant 0 : index
    %3 = vector.load %arg3[%c0_3, %c0_4] : memref<1x32xf32, #tpu.memory_space<vmem>>, vector<1x32xf32>
    %4 = vector.broadcast %3 : vector<1x32xf32> to vector<10x32xf32>
    %5 = arith.addf %2, %4 : vector<10x32xf32>
    %c0_5 = arith.constant 0 : index
    %c0_6 = arith.constant 0 : index
    %6 = vector.load %arg4[%c0_5, %c0_6] : memref<10x32xf32, #tpu.memory_space<vmem>>, vector<10x32xf32>
    tpu.vector_store %arg4[%c0_5, %c0_6], %5 {strides = array<i32>} : memref<10x32xf32, #tpu.memory_space<vmem>>, vector<10x32xf32>,
    return
  }
  func.func @transform_0(%arg0: i32) -> (i32, i32) {
    %c0_i32 = arith.constant 0 : i32
    %c0_i32_0 = arith.constant 0 : i32
    return %arg0, %c0_i32 : i32, i32
  }
  func.func @transform_1(%arg0: i32) -> (i32, i32) {
    %c0_i32 = arith.constant 0 : i32
    %c0_i32_0 = arith.constant 0 : i32
    %c0_i32_1 = arith.constant 0 : i32
    return %c0_i32, %c0_i32_0 : i32, i32
  }
  func.func @transform_2(%arg0: i32) -> (i32, i32) {
    %c0_i32 = arith.constant 0 : i32
    %c0_i32_0 = arith.constant 0 : i32
    %c0_i32_1 = arith.constant 0 : i32
    return %c0_i32, %c0_i32_0 : i32, i32
  }
  func.func @transform_3(%arg0: i32) -> (i32, i32) {
    %c0_i32 = arith.constant 0 : i32
    %c0_i32_0 = arith.constant 0 : i32
    return %arg0, %c0_i32 : i32, i32
  }
}

</mosaic_0001>

<bundles_post_ra>
// kernel: pret_attention_forward.11
= control target key start
LH: loop header
LB: loop body
LE: loop exit
PB: predicated region body
PF: predicated region fallthrough
CT: control target
= control target key end

     0   :  { %8 = vsyncpa [#allocation3], 0  ;;  %s229_s0 = inlined_call_operand.hbm [shape: f32[32,32], index: 0, kind: input, shape index: {}]   ;;  %s230_s1 = inlined_call_operand.hbm [shape: f32[32,96], index: 1, kind: input, shape index: {}]   ;;  %s231_s2 = inlined_call_operand.vmem [shape: f32[1,96], index: 2, kind: input, shape index: {}]   ;;  %s232_s3 = inlined_call_operand.vmem [shape: f32[32,96], index: 3, kind: output, shape index: {}]  }
   0x1   :  { %s14_s14 = sshll.u32 %s229_s0, 4  ;;  %s15_s14 = int_to_ptr.hbm [resolvable:$true] %s14_s14 }
   0x2   :  { %9 = vsyncpa [#allocation5], 0  ;;  %s184_s15 = smov [#allocation2]   ;;  %s27_s19 = sshll.u32 %s230_s1, 4  ;;  %s28_s19 = int_to_ptr.hbm [resolvable:$true] %s27_s19 }
   0x3   :  { %s16_s16 = sshll.u32 %s184_s15, 4  ;;  %s185_s20 = smov 128   ;;  %s17_s16 = int_to_ptr.vmem [resolvable:$true] %s16_s16 }
   0x4   :  { %s186_s21 = smov 8   ;;  %s187_s22 = smov [#allocation4]  }
   0x5   :  { %22 = dma.hbm_to_vmem [thread:$0]  %s15_s14, 512, %s17_s16, [#allocation3], %s185_s20, %s185_s20, %s186_s21  }
   0x6   :  { %s29_s23 = sshll.u32 %s187_s22, 4  ;;  %s30_s23 = int_to_ptr.vmem [resolvable:$true] %s29_s23 }
   0x7   :  { %35 = dma.hbm_to_vmem [thread:$0]  %s28_s19, 512, %s30_s23, [#allocation5], %s185_s20, %s185_s20, %s186_s21  }
   0x8   :  { %180 = dma.done.wait [#allocation3], 512  }
   0x9   :  { %181 = vsyncadd [#allocation3], 4294966784 }
   0xa   :  { %182 = dma.done.wait [#allocation5], 512  }
   0xb   :  { %183 = vsyncadd [#allocation5], 4294966784  ;;  %v53_v0 = vld [vmem:[#allocation4 + $0x18] sm:$0xff]  ;;  %v52_v1 = vld [vmem:[#allocation4 + $0x10] sm:$0xff]  ;;  %vm58_vm0 = vcmask 261120   ;;  %vm100_vm1 = vcmask 785408  }
   0xc   :  { %116 = vmatpush.msra.mxu2 %v53_v0  ;;  %117 = vmatpush.msra.mxu3 %v53_v0  ;;  %v51_v2 = vld [vmem:[#allocation4 + $0x8] sm:$0xff]  ;;  %v50_v3 = vld [vmem:[#allocation4] sm:$0xff]  ;;  %v48_v4 = vld [vmem:[#allocation2 + $0x10] sm:$0xff] }
   0xd   :  { %83 = vmatpush.msra.mxu0 %v53_v0  ;;  %115 = vmatpush.msra.mxu1 %v53_v0  ;;  %v49_v5 = vld [vmem:[#allocation2 + $0x18] sm:$0xff]  ;;  %v46_v6 = vld [vmem:[#allocation2] sm:$0xff]  ;;  %v47_v7 = vld [vmem:[#allocation2 + $0x8] sm:$0xff] }
   0xe   :  { %119 = vmatpush.msra.mxu2 %v52_v1  ;;  %120 = vmatpush.msra.mxu3 %v52_v1  ;;  %v131_v8 = vld [vmem:[%s231_s2] ss:$0 sm:$0xff] }
   0xf   :  { %84 = vmatpush.msra.mxu0 %v52_v1  ;;  %118 = vmatpush.msra.mxu1 %v52_v1 }
  0x10   :  { %122 = vmatpush.msra.mxu2 %v51_v2  ;;  %123 = vmatpush.msra.mxu3 %v51_v2 }
  0x11   :  { %85 = vmatpush.msra.mxu0 %v51_v2  ;;  %121 = vmatpush.msra.mxu1 %v51_v2 }
  0x12   :  { %125 = vmatpush.msra.mxu2 %v50_v3  ;;  %126 = vmatpush.msra.mxu3 %v50_v3 }
  0x13   :  { %113 = vmatmul.msk.f32.vlgmr.msra.gmra.mxu2 %vm58_vm0, %v48_v4  ;;  %114 = vmatmul.msk.f32.vlgmr.msra.gmra.mxu3 %vm58_vm0, %v49_v5 }
  0x14   :  { %86 = vmatpush.msra.mxu0 %v50_v3  ;;  %124 = vmatpush.msra.mxu1 %v50_v3 }
  0x15   :  { %111 = vmatmul.msk.f32.vlgmr.msra.gmra.mxu0 %vm58_vm0, %v46_v6  ;;  %112 = vmatmul.msk.f32.vlgmr.msra.gmra.mxu1 %vm58_vm0, %v47_v7 }
  0x92   :  { %v88_v9 = vpop.f32.mrf.mxu0  ;;  %v91_v10 = vpop.f32.mrf.mxu1 }
  0x93   :  { %v89_v11 = vadd.f32 %v131_v8, %v88_v9  ;;  %v92_v12 = vadd.f32 %v131_v8, %v91_v10 }
  0x95   :  { %101 = vst.msk [vmem:[%s232_s3] sm:$0xff] %vm100_vm1, %v89_v11 }
  0x96   :  { %102 = vst.msk [vmem:[%s232_s3 + $0x8] sm:$0xff] %vm100_vm1, %v92_v12  ;;  %v94_v13 = vpop.f32.mrf.mxu2  ;;  %v97_v14 = vpop.f32.mrf.mxu3 }
  0x97   :  { %v95_v15 = vadd.f32 %v131_v8, %v94_v13  ;;  %v98_v16 = vadd.f32 %v131_v8, %v97_v14 }
  0x99   :  { %103 = vst.msk [vmem:[%s232_s3 + $0x10] sm:$0xff] %vm100_vm1, %v95_v15 }
  0x9a   :  { %104 = vst.msk [vmem:[%s232_s3 + $0x18] sm:$0xff] %vm100_vm1, %v98_v16 }
  0x9b   :  { %109 = vsyncpa [#allocation3], 1 }
  0x9c   :  { %110 = vsyncpa [#allocation5], 1 }

// kernel: pret_attention_forward.12
= control target key start
LH: loop header
LB: loop body
LE: loop exit
PB: predicated region body
PF: predicated region fallthrough
CT: control target
= control target key end

     0   :  { %s487_s12 = smov 0   ;;  %s530_s0 = inlined_call_operand.vmem [shape: f32[16,16,4], index: 0, kind: input, shape index: {}]   ;;  %s531_s1 = inlined_call_operand.vmem [shape: f32[16,16,4], index: 1, kind: input, shape index: {}]   ;;  %s532_s2 = inlined_call_operand.vmem [shape: f32[16,16,4], index: 2, kind: input, shape index: {}]   ;;  %s533_s3 = inlined_call_operand.vmem [shape: f32[16,16,4], index: 3, kind: output, shape index: {}]  }
   0x1 LB: > { %s414_s13 = sadd.s32 4294967295, %s465_s12   ;;  %p418_p0 = scmp.ge.s32.totalorder %s465_s12, 1  ;;  %s465_s12 = sphi %s487_s12, %s13_s12  }
   0x2   : > { %p157_p1 = scmp.lt.s32.totalorder %s465_s12, 17 }
   0x4   : > { %p158_p2 = pnand %p418_p0, %p157_p1 }
   0x5   : > { %p191_p3 = scmp.lt.s32.totalorder (!%p158_p2), %s414_s13, 15 }
   0x6   : > { %161 = sbr.rel (%p158_p2) target bundleno = 555 (0x22b), region = 32 }
   0xb   : > { %s535_s13 = smov (!%p191_p3, %s414_s13), 15  ;;  %vm217_vm0 = vcmask 31744   ;;  %vm255_vm1 = vcmask 130048  }
   0xc   : > { %s495_s14 = sshll.u32 %s535_s13, 4 }
   0xd   : > { %s200_s17 = scalar_lea.vmem %s531_s1, %s495_s14  ;;  %s195_s20 = scalar_lea.vmem %s530_s0, %s495_s14 }
   0xe   : > { %v214_v0 = vld [vmem:[%s200_s17 + $0x8] sm:$0xff]  ;;  %v213_v1 = vld [vmem:[%s200_s17] sm:$0xff]  ;;  %s205_s23 = scalar_lea.vmem %s532_s2, %s495_s14  ;;  %s210_s26 = scalar_lea.vmem %s533_s3, %s495_s14 }
   0xf   : > { %439 = vmatpush.xpose.msk.msra.mxu2 %vm217_vm0, %v214_v0  ;;  %427 = vmatpush.xpose.msk.msra.mxu0 %vm217_vm0, %v214_v0  ;;  %v212_v2 = vld [vmem:[%s195_s20 + $0x8] sm:$0xff]  ;;  %v211_v3 = vld [vmem:[%s195_s20] sm:$0xff] }
  0x10   : > { %v216_v20 = vld [vmem:[%s205_s23 + $0x8] sm:$0xff]  ;;  %v215_v21 = vld [vmem:[%s205_s23] sm:$0xff] }
  0x11   : > { %441 = vmatpush.msra.mxu3 %v216_v20  ;;  %324 = vmatpush.msra.mxu1 %v216_v20 }
  0x13   : > { %440 = vmatpush.xpose.msk.msra.mxu2 %vm217_vm0, %v213_v1  ;;  %428 = vmatpush.xpose.msk.msra.mxu0 %vm217_vm0, %v213_v1 }
  0x14   : > { %442 = vmatpush.msra.mxu3 %v215_v21  ;;  %325 = vmatpush.msra.mxu1 %v215_v21 }
  0x16   : > { %430 = vmatmul.msk.f32.vlgmr.msra.gmra.mxu2 %vm217_vm0, %v212_v2  ;;  %429 = vmatmul.msk.f32.vlgmr.msra.gmra.mxu0 %vm217_vm0, %v211_v3 }
  0x93   : > { %v247_v6 = vpop.f32.mrf.mxu0 }
  0x94   : > { %v253_v8 = vmul.f32 0.5, %v247_v6 }
  0x96   : > { %v256_v9 = vsel %vm255_vm1, %v253_v8, -inf }
  0x99   : > { %v250_v4 = vpop.f32.mrf.mxu2 }
  0x9a   : > { %v254_v5 = vmul.f32 0.5, %v250_v4 }
  0x9c   : > { %v259_v7 = vsel %vm255_vm1, %v254_v5, -inf }
  0x9d   : > { %260 = vmax.xlane.f32.xlu0 %v259_v7 }
  0xa5   : > { %257 = vmax.xlane.f32.xlu0 %v256_v9 }
 0x110   : > { %v261_v10 = vpop.xlane.xlu0 %260 }
 0x111   : > { %v263_v11 = vsub.f32 %v254_v5, %v261_v10 }
 0x113   : > { %v266_v12 = vmul.f32 1.442695, %v263_v11 }
 0x115   : > { %451 = vpow2.f32 %v266_v12 }
 0x118   : > { %v258_v13 = vpop.xlane.xlu0 %257 }
 0x119   : > { %v262_v14 = vsub.f32 %v253_v8, %v258_v13 }
 0x11b   : > { %v452_v15 = vpop.eup %451  ;;  %v264_v16 = vmul.f32 1.442695, %v262_v14 }
 0x11c   : > { %v271_v17 = vsel %vm255_vm1, %v452_v15, 0.0 }
 0x11d   : > { %453 = vpow2.f32 %v264_v16  ;;  %272 = vadd.xlane.f32.xlu1 %v271_v17 }
 0x123   : > { %v454_v18 = vpop.eup %453 }
 0x124   : > { %v268_v19 = vsel %vm255_vm1, %v454_v18, 0.0 }
 0x125   : > { %269 = vadd.xlane.f32.xlu1 %v268_v19 }
 0x190   : > { %v273_v22 = vpop.xlane.xlu1 %272 }
 0x191   : > { %455 = vrcp.f32 %v273_v22  ;;  %v300_v27 = vand.u32 2147483648, %v273_v22  ;;  %v298_v29 = vand.u32 2147483647, %v273_v22  ;;  %vm294_vm3 = vweird.f32 %v273_v22 }
 0x193   : > { %v301_v32 = vor.u32 1.1754944e-38, %v300_v27  ;;  %vm299_vm5 = vcmp.eq.f32.partialorder %v298_v29, 8.507059e+37 }
 0x197   : > { %v456_v23 = vpop.eup %455 }
 0x198   : > { %v290_v24 = vmul.f32 %v456_v23, %v273_v22  ;;  %v270_v25 = vpop.xlane.xlu1 %269  ;;  %vm295_vm2 = vweird.f32 %v456_v23 }
 0x199   : > { %457 = vrcp.f32 %v270_v25  ;;  %vm296_vm4 = vmor %vm294_vm3, %vm295_vm2  ;;  %v285_v38 = vand.u32 2147483648, %v270_v25  ;;  %v283_v40 = vand.u32 2147483647, %v270_v25  ;;  %vm279_vm7 = vweird.f32 %v270_v25 }
 0x19a   : > { %v291_v26 = vsub.f32 1.0, %v290_v24 }
 0x19b   : > { %v286_v42 = vor.u32 1.1754944e-38, %v285_v38  ;;  %vm284_vm9 = vcmp.eq.f32.partialorder %v283_v40, 8.507059e+37 }
 0x19c   : > { %v292_v28 = vmul.f32 %v456_v23, %v291_v26 }
 0x19e   : > { %v293_v30 = vadd.f32 %v456_v23, %v292_v28 }
 0x19f   : > { %v458_v31 = vpop.eup %457 }
 0x1a0   : > { %v275_v33 = vmul.f32 %v458_v31, %v270_v25  ;;  %v297_v34 = vsel %vm296_vm4, %v456_v23, %v293_v30  ;;  %vm280_vm6 = vweird.f32 %v458_v31 }
 0x1a1   : > { %v302_v35 = vsel %vm299_vm5, %v301_v32, %v297_v34  ;;  %vm281_vm8 = vmor %vm279_vm7, %vm280_vm6 }
 0x1a2   : > { %v276_v36 = vsub.f32 1.0, %v275_v33  ;;  %v303_v37 = vmul.f32 %v452_v15, %v302_v35 }
 0x1a4   : > { %v277_v39 = vmul.f32 %v458_v31, %v276_v36  ;;  %432 = vmatmul.msk.f32.vlgmr.msra.gmra.mxu3 %vm255_vm1, %v303_v37 }
 0x1a6   : > { %v278_v41 = vadd.f32 %v458_v31, %v277_v39 }
 0x1a8   : > { %v282_v43 = vsel %vm281_vm8, %v458_v31, %v278_v41 }
 0x1a9   : > { %v287_v44 = vsel %vm284_vm9, %v286_v42, %v282_v43 }
 0x1aa   : > { %v288_v45 = vmul.f32 %v454_v18, %v287_v44 }
 0x1ac   : > { %431 = vmatmul.msk.f32.vlgmr.msra.gmra.mxu1 %vm255_vm1, %v288_v45 }
 0x227   : > { %v330_v46 = vpop.f32.mrf.mxu3 }
 0x228   : > { %334 = vst.msk [vmem:[%s210_s26 + $0x8] sm:$0xff] %vm217_vm0, %v330_v46 }
 0x229   : > { %v327_v47 = vpop.f32.mrf.mxu1 }
 0x22a   : > { %333 = vst.msk [vmem:[%s210_s26] sm:$0xff] %vm217_vm0, %v327_v47 }
 0x22b PF: > { %s13_s12 = sadd.s32 1, %s465_s12  }
 0x22c   : > { %p10_p4 = scmp.ge.s32.totalorder %s13_s12, 18  }
 0x22e   :  { %12 = sbr.rel (!%p10_p4) target bundleno = 1 (0x1), region = 68 }

// kernel: pret_attention_forward.13
= control target key start
LH: loop header
LB: loop body
LE: loop exit
PB: predicated region body
PF: predicated region fallthrough
CT: control target
= control target key end

     0   :  { %s198_s0 = inlined_call_operand.vmem [shape: f32[32,32], index: 0, kind: input, shape index: {}]   ;;  %s199_s1 = inlined_call_operand.vmem [shape: f32[32,32], index: 1, kind: input, shape index: {}]   ;;  %s200_s2 = inlined_call_operand.vmem [shape: f32[1,32], index: 2, kind: input, shape index: {}]   ;;  %s201_s3 = inlined_call_operand.hbm [shape: f32[32,32], index: 3, kind: output, shape index: {}]  }
   0x1   :  { %v22_v0 = vld [vmem:[%s199_s1 + $0x18] sm:$0xff]  ;;  %v21_v1 = vld [vmem:[%s199_s1 + $0x10] sm:$0xff]  ;;  %v20_v2 = vld [vmem:[%s199_s1 + $0x8] sm:$0xff] }
   0x2   :  { %96 = vmatpush.msra.mxu2 %v22_v0  ;;  %97 = vmatpush.msra.mxu3 %v22_v0 }
   0x3   :  { %52 = vmatpush.msra.mxu0 %v22_v0  ;;  %95 = vmatpush.msra.mxu1 %v22_v0 }
   0x4   :  { %99 = vmatpush.msra.mxu2 %v21_v1  ;;  %100 = vmatpush.msra.mxu3 %v21_v1 }
   0x5   :  { %8 = vsyncpa [#allocation3], 0  ;;  %v19_v3 = vld [vmem:[%s199_s1] sm:$0xff]  ;;  %53 = vmatpush.msra.mxu0 %v21_v1  ;;  %98 = vmatpush.msra.mxu1 %v21_v1  ;;  %v17_v4 = vld [vmem:[%s198_s0 + $0x10] sm:$0xff]  ;;  %vm27_vm0 = vcmask 261120   ;;  %s137_s29 = smov [#allocation2]  }
   0x6   :  { %102 = vmatpush.msra.mxu2 %v20_v2  ;;  %103 = vmatpush.msra.mxu3 %v20_v2  ;;  %v18_v5 = vld [vmem:[%s198_s0 + $0x18] sm:$0xff]  ;;  %v15_v6 = vld [vmem:[%s198_s0] sm:$0xff]  ;;  %v16_v7 = vld [vmem:[%s198_s0 + $0x8] sm:$0xff]  ;;  %s77_s0 = sshll.u32 %s137_s29, 4  ;;  %s79_s5 = sshll.u32 %s201_s3, 4  ;;  %s78_s0 = int_to_ptr.vmem [resolvable:$true] %s77_s0  ;;  %s80_s5 = int_to_ptr.hbm [resolvable:$true] %s79_s5 }
   0x7   :  { %54 = vmatpush.msra.mxu0 %v20_v2  ;;  %101 = vmatpush.msra.mxu1 %v20_v2  ;;  %v110_v8 = vld [vmem:[%s200_s2] ss:$0 sm:$0xff]  ;;  %s138_s2 = smov 128   ;;  %s139_s6 = smov 8  }
   0x8   :  { %105 = vmatpush.msra.mxu2 %v19_v3  ;;  %106 = vmatpush.msra.mxu3 %v19_v3 }
   0x9   :  { %93 = vmatmul.msk.f32.vlgmr.msra.gmra.mxu2 %vm27_vm0, %v17_v4  ;;  %94 = vmatmul.msk.f32.vlgmr.msra.gmra.mxu3 %vm27_vm0, %v18_v5 }
   0xa   :  { %55 = vmatpush.msra.mxu0 %v19_v3  ;;  %104 = vmatpush.msra.mxu1 %v19_v3 }
   0xb   :  { %91 = vmatmul.msk.f32.vlgmr.msra.gmra.mxu0 %vm27_vm0, %v15_v6  ;;  %92 = vmatmul.msk.f32.vlgmr.msra.gmra.mxu1 %vm27_vm0, %v16_v7 }
  0x88   :  { %v57_v9 = vpop.f32.mrf.mxu0  ;;  %v60_v10 = vpop.f32.mrf.mxu1 }
  0x89   :  { %v58_v11 = vadd.f32 %v110_v8, %v57_v9  ;;  %v61_v12 = vadd.f32 %v110_v8, %v60_v10 }
  0x8b   :  { %69 = vst.msk [vmem:[#allocation2] sm:$0xff] %vm27_vm0, %v58_v11 }
  0x8c   :  { %70 = vst.msk [vmem:[#allocation2 + $0x8] sm:$0xff] %vm27_vm0, %v61_v12  ;;  %v63_v13 = vpop.f32.mrf.mxu2  ;;  %v66_v14 = vpop.f32.mrf.mxu3 }
  0x8d   :  { %v64_v15 = vadd.f32 %v110_v8, %v63_v13  ;;  %v67_v16 = vadd.f32 %v110_v8, %v66_v14 }
  0x8f   :  { %71 = vst.msk [vmem:[#allocation2 + $0x10] sm:$0xff] %vm27_vm0, %v64_v15 }
  0x90   :  { %72 = vst.msk [vmem:[#allocation2 + $0x18] sm:$0xff] %vm27_vm0, %v67_v16 }
  0x91   :  { %85 = dma.vmem_to_hbm [thread:$0]  %s78_s0, 512, %s80_s5, [#allocation3], %s138_s2, %s138_s2, %s139_s6  }
  0x92   :  { %135 = dma.done.wait [#allocation3], 512  }
  0x93   :  { %136 = vsyncadd [#allocation3], 4294966784 }
  0x94   :  { %90 = vsyncpa [#allocation3], 1 }

// kernel: pret_attention_forward.7
= control target key start
LH: loop header
LB: loop body
LE: loop exit
PB: predicated region body
PF: predicated region fallthrough
CT: control target
= control target key end

     0   :  { %s429_s12 = smov 0   ;;  %s460_s0 = inlined_call_operand.vmem [shape: f32[2,4,32], index: 0, kind: input, shape index: {}]   ;;  %s461_s1 = inlined_call_operand.vmem [shape: f32[2,16,32], index: 1, kind: input, shape index: {}, may-alias: {1,2}]   ;;  %s462_s2 = inlined_call_operand.vmem [shape: f32[2,16,32], index: 2, kind: input, shape index: {}, may-alias: {1,2}]   ;;  %s463_s3 = inlined_call_operand.vmem [shape: f32[2,4,32], index: 3, kind: output, shape index: {}]  }
   0x1 LB: > { %s370_s13 = sadd.s32 4294967295, %s407_s12   ;;  %p374_p0 = scmp.ge.s32.totalorder %s407_s12, 1  ;;  %s407_s12 = sphi %s429_s12, %s13_s12  }
   0x2   : > { %p156_p1 = scmp.lt.s32.totalorder %s407_s12, 3 }
   0x4   : > { %p157_p2 = pnand %p374_p0, %p156_p1 }
   0x5   : > { %p188_p3 = scmp.lt.s32.totalorder (!%p157_p2), %s370_s13, 1 }
   0x6   : > { %160 = sbr.rel (%p157_p2) target bundleno = 541 (0x21d), region = 32 }
   0xb   : > { %s465_s13 = smov (!%p188_p3, %s370_s13), 1  ;;  %vm211_vm0 = vcmask 261120   ;;  %vm242_vm1 = vcmask 125952   ;;  %vm267_vm6 = vcmask 130048   ;;  %vm291_vm7 = vcmask 257024  }
   0xc   : > { %s387_s14 = sshll.u32 %s465_s13, 4  ;;  %s375_s18 = sshll.u32 %s465_s13, 2 }
   0xd   : > { %s196_s17 = scalar_lea.vmem %s461_s1, %s387_s14  ;;  %s191_s21 = scalar_lea.vmem %s460_s0, %s375_s18 }
   0xe   : > { %v208_v0 = vld [vmem:[%s196_s17 + $0x8] sm:$0xff]  ;;  %v207_v1 = vld [vmem:[%s196_s17] sm:$0xff]  ;;  %s201_s24 = scalar_lea.vmem %s462_s2, %s387_s14  ;;  %s205_s27 = scalar_lea.vmem %s463_s3, %s375_s18 }
   0xf   : > { %381 = vmatpush.xpose.msk.msra.mxu0 %vm211_vm0, %v208_v0  ;;  %v206_v2 = vld [vmem:[%s191_s21] sm:$0xf]  ;;  %v210_v11 = vld [vmem:[%s201_s24 + $0x8] sm:$0xff] }
  0x10   : > { %v209_v12 = vld [vmem:[%s201_s24] sm:$0xff]  ;;  %285 = vmatpush.msra.mxu1 %v210_v11 }
  0x12   : > { %286 = vmatpush.msra.mxu1 %v209_v12 }
  0x13   : > { %382 = vmatpush.xpose.msk.msra.mxu0 %vm211_vm0, %v207_v1 }
  0x16   : > { %383 = vmatmul.msk.f32.vlgmr.msra.gmra.mxu0 %vm211_vm0, %v206_v2 }
  0x93   : > { %v238_v3 = vpop.f32.mrf.mxu0 }
  0x94   : > { %v241_v4 = vmul.f32 0.17677669, %v238_v3 }
  0x96   : > { %v243_v5 = vsel %vm242_vm1, %v241_v4, -inf }
  0x97   : > { %244 = vmax.xlane.f32.xlu0 %v243_v5 }
 0x10a   : > { %v245_v6 = vpop.xlane.xlu0 %244 }
 0x10b   : > { %v246_v7 = vsub.f32 %v241_v4, %v245_v6 }
 0x10d   : > { %v247_v8 = vmul.f32 1.442695, %v246_v7 }
 0x10f   : > { %397 = vpow2.f32 %v247_v8 }
 0x115   : > { %v398_v9 = vpop.eup %397 }
 0x116   : > { %v249_v10 = vsel %vm242_vm1, %v398_v9, 0.0 }
 0x117   : > { %250 = vadd.xlane.f32.xlu0 %v249_v10 }
 0x18a   : > { %v251_v13 = vpop.xlane.xlu0 %250 }
 0x18b   : > { %399 = vrcp.f32 %v251_v13  ;;  %v263_v17 = vand.u32 2147483648, %v251_v13  ;;  %v261_v19 = vand.u32 2147483647, %v251_v13  ;;  %vm257_vm3 = vweird.f32 %v251_v13 }
 0x18d   : > { %v264_v21 = vor.u32 1.1754944e-38, %v263_v17  ;;  %vm262_vm5 = vcmp.eq.f32.partialorder %v261_v19, 8.507059e+37 }
 0x191   : > { %v400_v14 = vpop.eup %399 }
 0x192   : > { %v253_v15 = vmul.f32 %v400_v14, %v251_v13  ;;  %vm258_vm2 = vweird.f32 %v400_v14 }
 0x193   : > { %vm259_vm4 = vmor %vm257_vm3, %vm258_vm2 }
 0x194   : > { %v254_v16 = vsub.f32 1.0, %v253_v15 }
 0x196   : > { %v255_v18 = vmul.f32 %v400_v14, %v254_v16 }
 0x198   : > { %v256_v20 = vadd.f32 %v400_v14, %v255_v18 }
 0x19a   : > { %v260_v22 = vsel %vm259_vm4, %v400_v14, %v256_v20 }
 0x19b   : > { %v265_v23 = vsel %vm262_vm5, %v264_v21, %v260_v22 }
 0x19c   : > { %v266_v24 = vmul.f32 %v398_v9, %v265_v23 }
 0x19e   : > { %384 = vmatmul.msk.f32.vlgmr.msra.gmra.mxu1 %vm267_vm6, %v266_v24 }
 0x21b   : > { %v288_v25 = vpop.f32.mrf.mxu1 }
 0x21c   : > { %292 = vst.msk [vmem:[%s205_s27] sm:$0xf] %vm291_vm7, %v288_v25 }
 0x21d PF: > { %s13_s12 = sadd.s32 1, %s407_s12  }
 0x21e   : > { %p10_p4 = scmp.ge.s32.totalorder %s13_s12, 4  }
 0x220   :  { %12 = sbr.rel (!%p10_p4) target bundleno = 1 (0x1), region = 68 }

// kernel: pret_attention_forward.8
= control target key start
LH: loop header
LB: loop body
LE: loop exit
PB: predicated region body
PF: predicated region fallthrough
CT: control target
= control target key end

     0   :  { %vm24_vm0 = vcmask 261120   ;;  %vm54_vm1 = vcmask 785408   ;;  %vm56_vm2 = vcmask 779264   ;;  %s116_s1 = inlined_call_operand.vmem [shape: f32[32,96], index: 1, kind: input, shape index: {}]   ;;  %s117_s2 = inlined_call_operand.vmem [shape: f32[1,96], index: 2, kind: input, shape index: {}]   ;;  %s118_s0 = inlined_call_operand.vmem [shape: f32[10,32], index: 0, kind: input, shape index: {}]   ;;  %s119_s3 = inlined_call_operand.vmem [shape: f32[10,96], index: 3, kind: output, shape index: {}]  }
   0x1   :  { %v19_v0 = vld [vmem:[%s116_s1 + $0x18] sm:$0xff]  ;;  %v18_v1 = vld [vmem:[%s116_s1 + $0x10] sm:$0xff]  ;;  %v17_v2 = vld [vmem:[%s116_s1 + $0x8] sm:$0xff] }
   0x2   :  { %43 = vmatpush.msra.mxu0 %v19_v0  ;;  %64 = vmatpush.msra.mxu1 %v19_v0  ;;  %v16_v3 = vld [vmem:[%s116_s1] sm:$0xff]  ;;  %v15_v5 = vld [vmem:[%s118_s0 + $0x8] sm:$0x3] }
   0x3   :  { %v14_v4 = vld [vmem:[%s118_s0] sm:$0xff] }
   0x4   :  { %44 = vmatpush.msra.mxu0 %v18_v1  ;;  %65 = vmatpush.msra.mxu1 %v18_v1  ;;  %v68_v6 = vld [vmem:[%s117_s2] ss:$0 sm:$0xff] }
   0x6   :  { %45 = vmatpush.msra.mxu0 %v17_v2  ;;  %66 = vmatpush.msra.mxu1 %v17_v2 }
   0x8   :  { %46 = vmatpush.msra.mxu0 %v16_v3  ;;  %67 = vmatpush.msra.mxu1 %v16_v3 }
   0x9   :  { %62 = vmatmul.msk.f32.vlgmr.msra.gmra.mxu0 %vm24_vm0, %v14_v4  ;;  %63 = vmatmul.msk.f32.vlgmr.msra.gmra.mxu1 %vm24_vm0, %v15_v5 }
  0x86   :  { %v48_v7 = vpop.f32.mrf.mxu0  ;;  %v51_v8 = vpop.f32.mrf.mxu1 }
  0x87   :  { %v49_v9 = vadd.f32 %v68_v6, %v48_v7  ;;  %v52_v10 = vadd.f32 %v68_v6, %v51_v8 }
  0x89   :  { %55 = vst.msk [vmem:[%s119_s3] sm:$0xff] %vm54_vm1, %v49_v9 }
  0x8a   :  { %57 = vst.msk [vmem:[%s119_s3 + $0x8] sm:$0x3] %vm56_vm2, %v52_v10 }

// kernel: pret_attention_forward.9
= control target key start
LH: loop header
LB: loop body
LE: loop exit
PB: predicated region body
PF: predicated region fallthrough
CT: control target
= control target key end

     0   :  { %s418_s12 = smov 0   ;;  %s447_s0 = inlined_call_operand.vmem [shape: f32[16,5,4], index: 0, kind: input, shape index: {}]   ;;  %s448_s1 = inlined_call_operand.vmem [shape: f32[16,5,4], index: 1, kind: input, shape index: {}]   ;;  %s449_s2 = inlined_call_operand.vmem [shape: f32[16,5,4], index: 2, kind: input, shape index: {}]   ;;  %s450_s3 = inlined_call_operand.vmem [shape: f32[16,5,4], index: 3, kind: output, shape index: {}]  }
   0x1 LB: > { %s363_s13 = sadd.s32 4294967295, %s396_s12   ;;  %p367_p0 = scmp.ge.s32.totalorder %s396_s12, 1  ;;  %s396_s12 = sphi %s418_s12, %s13_s12  }
   0x2   : > { %p154_p1 = scmp.lt.s32.totalorder %s396_s12, 17 }
   0x4   : > { %p155_p2 = pnand %p367_p0, %p154_p1 }
   0x5   : > { %p184_p3 = scmp.lt.s32.totalorder (!%p155_p2), %s363_s13, 15 }
   0x6   : > { %158 = sbr.rel (%p155_p2) target bundleno = 537 (0x219), region = 32 }
   0xb   : > { %s452_s13 = smov (!%p184_p3, %s363_s13), 15  ;;  %vm203_vm0 = vcmask 31744   ;;  %vm231_vm1 = vcmask 36864   ;;  %vm260_vm2 = vcmask 1044480   ;;  %vm256_vm7 = vcmask 39936  }
   0xc   : > { %s426_s14 = sshll.u32 %s452_s13, 3  ;;  %vm284_vm8 = vcmask 28672  }
   0xd   : > { %s191_s17 = scalar_lea.vmem %s448_s1, %s426_s14  ;;  %s187_s20 = scalar_lea.vmem %s447_s0, %s426_s14 }
   0xe   : > { %v201_v0 = vld [vmem:[%s191_s17] sm:$0x1f]  ;;  %s195_s23 = scalar_lea.vmem %s449_s2, %s426_s14  ;;  %s199_s26 = scalar_lea.vmem %s450_s3, %s426_s14 }
   0xf   : > { %372 = vmatpush.xpose.msk.msra.mxu0 %vm203_vm0, %v201_v0  ;;  %v200_v1 = vld [vmem:[%s187_s20] sm:$0x1f] }
  0x10   : > { %v202_v10 = vld [vmem:[%s195_s23] sm:$0x1f] }
  0x11   : > { %374 = vmatpush.msk.msra.mxu1 %vm260_vm2, %v202_v10 }
  0x12   : > { %373 = vmatmul.msk.f32.vlgmr.msra.gmra.mxu0 %vm203_vm0, %v200_v1 }
  0x8f   : > { %v227_v2 = vpop.f32.mrf.mxu0 }
  0x90   : > { %v230_v3 = vmul.f32 0.5, %v227_v2 }
  0x92   : > { %v232_v4 = vsel %vm231_vm1, %v230_v3, -inf }
  0x93   : > { %233 = vmax.xlane.f32.xlu0 %v232_v4 }
 0x106   : > { %v234_v5 = vpop.xlane.xlu0 %233 }
 0x107   : > { %v235_v6 = vsub.f32 %v230_v3, %v234_v5 }
 0x109   : > { %v236_v7 = vmul.f32 1.442695, %v235_v6 }
 0x10b   : > { %386 = vpow2.f32 %v236_v7 }
 0x111   : > { %v387_v8 = vpop.eup %386 }
 0x112   : > { %v238_v9 = vsel %vm231_vm1, %v387_v8, 0.0 }
 0x113   : > { %239 = vadd.xlane.f32.xlu0 %v238_v9 }
 0x186   : > { %v240_v11 = vpop.xlane.xlu0 %239 }
 0x187   : > { %388 = vrcp.f32 %v240_v11  ;;  %v252_v15 = vand.u32 2147483648, %v240_v11  ;;  %v250_v17 = vand.u32 2147483647, %v240_v11  ;;  %vm246_vm4 = vweird.f32 %v240_v11 }
 0x189   : > { %v253_v19 = vor.u32 1.1754944e-38, %v252_v15  ;;  %vm251_vm6 = vcmp.eq.f32.partialorder %v250_v17, 8.507059e+37 }
 0x18d   : > { %v389_v12 = vpop.eup %388 }
 0x18e   : > { %v242_v13 = vmul.f32 %v389_v12, %v240_v11  ;;  %vm247_vm3 = vweird.f32 %v389_v12 }
 0x18f   : > { %vm248_vm5 = vmor %vm246_vm4, %vm247_vm3 }
 0x190   : > { %v243_v14 = vsub.f32 1.0, %v242_v13 }
 0x192   : > { %v244_v16 = vmul.f32 %v389_v12, %v243_v14 }
 0x194   : > { %v245_v18 = vadd.f32 %v389_v12, %v244_v16 }
 0x196   : > { %v249_v20 = vsel %vm248_vm5, %v389_v12, %v245_v18 }
 0x197   : > { %v254_v21 = vsel %vm251_vm6, %v253_v19, %v249_v20 }
 0x198   : > { %v255_v22 = vmul.f32 %v387_v8, %v254_v21 }
 0x19a   : > { %375 = vmatmul.msk.f32.vlgmr.msra.gmra.mxu1 %vm256_vm7, %v255_v22 }
 0x217   : > { %v281_v23 = vpop.f32.mrf.mxu1 }
 0x218   : > { %285 = vst.msk [vmem:[%s199_s26] sm:$0x1f] %vm284_vm8, %v281_v23 }
 0x219 PF: > { %s13_s12 = sadd.s32 1, %s396_s12  }
 0x21a   : > { %p10_p4 = scmp.ge.s32.totalorder %s13_s12, 18  }
 0x21c   :  { %12 = sbr.rel (!%p10_p4) target bundleno = 1 (0x1), region = 68 }

// kernel: pret_attention_forward.10
= control target key start
LH: loop header
LB: loop body
LE: loop exit
PB: predicated region body
PF: predicated region fallthrough
CT: control target
= control target key end

     0   :  { %vm24_vm0 = vcmask 261120   ;;  %vm55_vm1 = vcmask 254976   ;;  %s115_s1 = inlined_call_operand.vmem [shape: f32[32,32], index: 1, kind: input, shape index: {}]   ;;  %s116_s2 = inlined_call_operand.vmem [shape: f32[1,32], index: 2, kind: input, shape index: {}]   ;;  %s117_s0 = inlined_call_operand.vmem [shape: f32[10,32], index: 0, kind: input, shape index: {}]   ;;  %s118_s3 = inlined_call_operand.vmem [shape: f32[10,32], index: 3, kind: output, shape index: {}]  }
   0x1   :  { %v19_v0 = vld [vmem:[%s115_s1 + $0x18] sm:$0xff]  ;;  %v18_v1 = vld [vmem:[%s115_s1 + $0x10] sm:$0xff]  ;;  %v17_v2 = vld [vmem:[%s115_s1 + $0x8] sm:$0xff] }
   0x2   :  { %43 = vmatpush.msra.mxu0 %v19_v0  ;;  %63 = vmatpush.msra.mxu1 %v19_v0  ;;  %v16_v3 = vld [vmem:[%s115_s1] sm:$0xff]  ;;  %v15_v5 = vld [vmem:[%s117_s0 + $0x8] sm:$0x3] }
   0x3   :  { %v14_v4 = vld [vmem:[%s117_s0] sm:$0xff] }
   0x4   :  { %44 = vmatpush.msra.mxu0 %v18_v1  ;;  %64 = vmatpush.msra.mxu1 %v18_v1  ;;  %v67_v6 = vld [vmem:[%s116_s2] ss:$0 sm:$0xff] }
   0x6   :  { %45 = vmatpush.msra.mxu0 %v17_v2  ;;  %65 = vmatpush.msra.mxu1 %v17_v2 }
   0x8   :  { %46 = vmatpush.msra.mxu0 %v16_v3  ;;  %66 = vmatpush.msra.mxu1 %v16_v3 }
   0x9   :  { %61 = vmatmul.msk.f32.vlgmr.msra.gmra.mxu0 %vm24_vm0, %v14_v4  ;;  %62 = vmatmul.msk.f32.vlgmr.msra.gmra.mxu1 %vm24_vm0, %v15_v5 }
  0x86   :  { %v48_v7 = vpop.f32.mrf.mxu0  ;;  %v51_v8 = vpop.f32.mrf.mxu1 }
  0x87   :  { %v49_v9 = vadd.f32 %v67_v6, %v48_v7  ;;  %v52_v10 = vadd.f32 %v67_v6, %v51_v8 }
  0x89   :  { %54 = vst.msk [vmem:[%s118_s3] sm:$0xff] %vm24_vm0, %v49_v9 }
  0x8a   :  { %56 = vst.msk [vmem:[%s118_s3 + $0x8] sm:$0x3] %vm55_vm1, %v52_v10 }

</bundles_post_ra>
